<compile_context>
chip_gen: v5e
topology: v5e:2x2
jax: 0.10.0
libtpu: 0.0.40
codegen_flags: <defaults>
</compile_context>

<pallas_src>
import functools

import jax
import jax.numpy as jnp
from jax.experimental import pallas as pl
from jax.experimental.pallas import tpu as pltpu


def _gap_kernel(x_ref, lnw_ref, lnb_ref, w_ref, b_ref, o_ref, acc_ref, *,
                eps, inv_patches, inv_d, l_tile, l_total, ragged_l):
    """grid = (batch tiles, L tiles).  One step of:
         partial sum over an L tile -> f32 accumulator;
         on the last L tile: LayerNorm + Linear head + lane-dense store.

    x_ref:   (TB, TL, D)   batch x sequence tile of hidden states
    lnw_ref: (1, D)        LayerNorm weight   (resident across grid steps)
    lnb_ref: (1, D)        LayerNorm bias
    w_ref:   (D, O_pad)    head weight, pre-transposed + lane-padded
    b_ref:   (1, O_pad)    head bias, lane-padded
    o_ref:   (TB, O_pad)   output tile (lane-dense store, written on last L step)
    acc_ref: (TB, D) f32   VMEM scratch accumulator for the L reduction
    """
    l = pl.program_id(1)
    n_l = pl.num_programs(1)

    x = x_ref[...]                                          # (TB, TL, D), input dtype
    if ragged_l:
        # Last L tile sticks out past the array: zero the out-of-range rows before summing
        # (VPU selects are free filler for this HBM-bound kernel).
        row = jax.lax.broadcasted_iota(jnp.int32, (x.shape[1], 1), 0)
        valid = (l * l_tile + row) < l_total
        x = jnp.where(valid, x, jnp.zeros_like(x))

    # Sublane reduce over the L tile, accumulating in f32 (no materialized f32 copy of x).
    part = jnp.sum(x, axis=1, dtype=jnp.float32)            # (TB, D)

    @pl.when(l == 0)
    def _():
        # First L tile: seed accumulator and drop the CLS row (sequence position 0),
        # instead of slicing x[:, 1:, :] (sublane-misaligned -> masked copy).
        acc_ref[...] = part - x[:, 0, :].astype(jnp.float32)

    @pl.when(l != 0)
    def _():
        acc_ref[...] += part

    @pl.when(l == n_l - 1)
    def _():
        pooled = acc_ref[...] * inv_patches                  # mean over the L-1 patches

        # LayerNorm over D in f32 (matches nn.LayerNorm: eps inside the sqrt).
        mu = jnp.sum(pooled, axis=-1, keepdims=True) * inv_d
        centered = pooled - mu
        var = jnp.sum(centered * centered, axis=-1, keepdims=True) * inv_d
        normed = centered * jax.lax.rsqrt(var + eps)
        normed = normed * lnw_ref[...].astype(jnp.float32) + lnb_ref[...].astype(jnp.float32)

        # Linear head on the MXU; operands follow the weight dtype (pass bf16 weights on
        # v6e/v7x for full-rate MXU), accumulation in f32.
        out = jnp.dot(normed.astype(w_ref.dtype), w_ref[...],
                      preferred_element_type=jnp.float32)
        out = out + b_ref[...].astype(jnp.float32)
        o_ref[...] = out.astype(o_ref.dtype)


def _round_up(n, m):
    return ((n + m - 1) // m) * m


def _round_down(n, m):
    return (n // m) * m


def _sublane_multiple(dtype):
    # Native sublane packing: 8 rows for 4-byte, 16 for 2-byte, 32 for 1-byte dtypes.
    return max(8, 32 // jnp.dtype(dtype).itemsize)


def _default_vmem_limit_bytes():
    # Generation-aware: ~3/4 of physical VMEM, capped.
    #   v7x (64 MiB)      -> ~48 MiB
    #   v5e/v6e (128 MiB) -> ~96 MiB
    # Fallback (no query available): 48 MiB, safe on every generation.
    try:
        cap = getattr(pltpu.get_tpu_info(), "vmem_capacity_bytes", None)
        if cap:
            return int(min((int(cap) * 3) // 4, 112 * 1024 * 1024))
    except Exception:
        pass
    return 48 * 1024 * 1024


def global_average_pooler(x, ln_weight, ln_bias, head_weight, head_bias, *,
                          ln_eps=1e-6, batch_tile=None, seq_tile=None,
                          vmem_limit_bytes=None):
    """x: (B, L, D); head_weight: (output_dim, input_dim) PyTorch-style; returns (B, output_dim)."""
    B, L, D = x.shape
    assert L > 1, "GlobalAveragePooler needs at least one non-CLS patch (L > 1)"
    O = head_weight.shape[0]
    O_pad = _round_up(O, 128)                  # lane-dense output -> unmasked stores

    out_dtype = x.dtype
    x_item = jnp.dtype(x.dtype).itemsize
    out_item = jnp.dtype(out_dtype).itemsize

    if vmem_limit_bytes is None:
        vmem_limit_bytes = _default_vmem_limit_bytes()
    vmem_limit_bytes = int(vmem_limit_bytes)

    # One-time parameter prep (hoist out of any hot loop in real use).
    lnw = ln_weight.reshape(1, D)
    lnb = ln_bias.reshape(1, D)
    w_t = jnp.pad(head_weight.T, ((0, 0), (0, O_pad - O)))            # (D, O_pad)
    b_p = jnp.pad(head_bias.reshape(1, O), ((0, 0), (0, O_pad - O)))  # (1, O_pad)

    # ---------------- VMEM budget -> (batch_tile, seq_tile) ----------------
    # Resident parameter bytes; the default pipeliner double-buffers them (factor 2).
    # TODO(synk): mark the 4 constant param specs pipeline_mode=pl.Buffered(1) once
    # single-buffered pipeline_mode is verified on this jax build; that halves this term.
    resident = 2 * (2 * D * jnp.dtype(lnw.dtype).itemsize
                    + D * O_pad * jnp.dtype(w_t.dtype).itemsize
                    + O_pad * jnp.dtype(b_p.dtype).itemsize)

    sub = _sublane_multiple(out_dtype)

    def per_row_bytes(tl, ragged):
        # Per batch-row footprint of one grid step:
        #   double-buffered x tile (+1 tile if the ragged-L mask copy materializes),
        #   double-buffered output block, f32 accumulator scratch,
        #   f32 epilogue temps (pooled/centered/normed/cast) and the f32 matmul result.
        return ((2 + (1 if ragged else 0)) * tl * D * x_item
                + 2 * O_pad * out_item
                + 5 * D * 4
                + O_pad * 4)

    def max_tb(tl, ragged):
        avail = vmem_limit_bytes - resident
        return (avail // per_row_bytes(tl, ragged)) if avail > 0 else 0

    # Keep >= 2 batch steps when B is large enough so v7x's two TensorCores both get work.
    # (On single-core v5e/v6e the extra grid step costs ~0.35 us -- negligible.)
    tb_cap = B
    if B >= 2 * sub:
        tb_cap = min(B, _round_up(pl.cdiv(B, 2), sub))

    tl = L if seq_tile is None else max(1, min(int(seq_tile), L))
    if tl < L:
        tl = min(L, max(8, _round_down(tl, 8)))              # L-tile rows must be 8-aligned

    fit = max_tb(tl, (L % tl) != 0)
    cand = min(fit, B, tb_cap)
    if cand == B:
        tb = B
    else:
        tb = _round_down(cand, sub)                          # round DOWN only, never inflate
    if tb == 0:
        # Even a minimal full-sequence row tile busts the budget: tile the L axis too.
        tb = B if B < sub else sub
        if seq_tile is None:
            fixed = 2 * O_pad * out_item + 5 * D * 4 + O_pad * 4
            avail = vmem_limit_bytes - resident - tb * fixed
            tl_fit = (avail // (3 * tb * D * x_item)) if avail > 0 else 0
            tl = min(L, max(8, _round_down(tl_fit, 8)))
    if batch_tile is not None:
        tb = max(1, min(int(batch_tile), B))
    # Output-block rows must be a sublane multiple unless they cover all of B.
    if tb < B and tb % sub != 0:
        tb = min(B, max(sub, _round_down(tb, sub))) if B >= sub else B

    n_b = pl.cdiv(B, tb)
    n_l = pl.cdiv(L, tl)
    ragged_l = (L % tl) != 0

    kernel = functools.partial(
        _gap_kernel,
        eps=float(ln_eps),
        inv_patches=1.0 / float(L - 1),
        inv_d=1.0 / float(D),
        l_tile=int(tl),
        l_total=int(L),
        ragged_l=bool(ragged_l),
    )

    # TODO(synk): the output_dim=None (nn.Identity head) variant of the module is not fused
    # here; this path always applies the linear head.
    out_pad = pl.pallas_call(
        kernel,
        out_shape=jax.ShapeDtypeStruct((B, O_pad), out_dtype),
        grid=(n_b, n_l),
        in_specs=[
            pl.BlockSpec((tb, tl, D), lambda i, l: (i, l, 0)),   # batch x seq tile of x
            pl.BlockSpec((1, D), lambda i, l: (0, 0)),           # LN weight (resident)
            pl.BlockSpec((1, D), lambda i, l: (0, 0)),           # LN bias   (resident)
            pl.BlockSpec((D, O_pad), lambda i, l: (0, 0)),       # head weight (resident)
            pl.BlockSpec((1, O_pad), lambda i, l: (0, 0)),       # head bias   (resident)
        ],
        out_specs=pl.BlockSpec((tb, O_pad), lambda i, l: (i, 0)),
        scratch_shapes=[pltpu.VMEM((tb, D), jnp.float32)],        # L-reduction accumulator
        compiler_params=pltpu.CompilerParams(
            dimension_semantics=("parallel", "arbitrary"),        # batch sharded, L reduced
            vmem_limit_bytes=vmem_limit_bytes,
        ),
    )(x, lnw, lnb, w_t, b_p)

    return out_pad[:, :O]


def _reference(x, ln_weight, ln_bias, head_weight, head_bias, ln_eps=1e-6):
    pooled = jnp.mean(x[:, 1:, :], axis=1)
    mu = jnp.mean(pooled, axis=-1, keepdims=True)
    var = jnp.mean((pooled - mu) ** 2, axis=-1, keepdims=True)
    normed = (pooled - mu) / jnp.sqrt(var + ln_eps)
    normed = normed * ln_weight + ln_bias
    return normed @ head_weight.T + head_bias


if __name__ == "__main__":
    # Small shapes consistent with the module: bsz=2, seq_len=9 (1 CLS + 8 patches),
    # input_dim=32, output_dim=16.
    B, L, D, O = 2, 9, 32, 16
    key = jax.random.PRNGKey(0)
    kx, kw, kb = jax.random.split(key, 3)

    x = jax.random.normal(kx, (B, L, D), dtype=jnp.float32)

    # PyTorch-default-style params: LN weight=1, bias=0; Linear ~ U(-1/sqrt(D), 1/sqrt(D)).
    ln_weight = jnp.ones((D,), dtype=jnp.float32)
    ln_bias = jnp.zeros((D,), dtype=jnp.float32)
    bound = 1.0 / (D ** 0.5)
    head_weight = jax.random.uniform(kw, (O, D), jnp.float32, -bound, bound)
    head_bias = jax.random.uniform(kb, (O,), jnp.float32, -bound, bound)

    out = global_average_pooler(x, ln_weight, ln_bias, head_weight, head_bias)
    out = jax.block_until_ready(out)

    ref = _reference(x, ln_weight, ln_bias, head_weight, head_bias)
    assert out.shape == (B, O)
    # Note: if the caller feeds bf16 x / weights, loosen this tolerance accordingly.
    assert jnp.allclose(out, ref, atol=1e-5, rtol=1e-5), "mismatch vs reference"

    print("KERNEL_OK")
</pallas_src>

<mosaic_0001>
module attributes {stable_mosaic.version = 11 : i64} {
  func.func @_gap_kernel(%arg0: i32, %arg1: i32, %arg2: memref<2x9x32xf32, #tpu.memory_space<vmem>>, %arg3: memref<1x32xf32, #tpu.memory_space<vmem>>, %arg4: memref<1x32xf32, #tpu.memory_space<vmem>>, %arg5: memref<32x128xf32, #tpu.memory_space<vmem>>, %arg6: memref<1x128xf32, #tpu.memory_space<vmem>>, %arg7: memref<2x128xf32, #tpu.memory_space<vmem>>, %arg8: memref<2x32xf32, #tpu.memory_space<vmem>>) attributes {dimension_semantics = [#tpu.dimension_semantics<parallel>, #tpu.dimension_semantics<arbitrary>], iteration_bounds = array<i64: 1, 1>, scalar_prefetch = 0 : i64, scratch_operands = 1 : i64, tpu.core_type = #tpu.core_type<tc>, window_params = [{transform_indices = @transform_0, window_bounds = array<i64: 2, 9, 32>}, {pipeline_mode = #tpu.pipeline_mode<synchronous>, transform_indices = @transform_1, window_bounds = array<i64: 1, 32>}, {pipeline_mode = #tpu.pipeline_mode<synchronous>, transform_indices = @transform_2, window_bounds = array<i64: 1, 32>}, {pipeline_mode = #tpu.pipeline_mode<synchronous>, transform_indices = @transform_3, window_bounds = array<i64: 32, 128>}, {pipeline_mode = #tpu.pipeline_mode<synchronous>, transform_indices = @transform_4, window_bounds = array<i64: 1, 128>}, {transform_indices = @transform_5, window_bounds = array<i64: 2, 128>}]} {
    %c0 = arith.constant 0 : index
    %c0_0 = arith.constant 0 : index
    %c0_1 = arith.constant 0 : index
    %0 = vector.load %arg2[%c0, %c0_0, %c0_1] : memref<2x9x32xf32, #tpu.memory_space<vmem>>, vector<2x9x32xf32>
    %cst = arith.constant dense<0.000000e+00> : vector<2x32xf32>
    %1 = vector.multi_reduction <add>, %0, %cst [1] : vector<2x9x32xf32> to vector<2x32xf32>
    %c0_i32 = arith.constant 0 : i32
    %2 = arith.cmpi eq, %arg1, %c0_i32 : i32
    %3 = arith.extui %2 : i1 to i32
    %c0_i32_2 = arith.constant 0 : i32
    %4 = arith.cmpi ne, %3, %c0_i32_2 : i32
    scf.if %4 {
      %11 = vector.extract_strided_slice %0 {offsets = [0, 0, 0], sizes = [2, 1, 32], strides = [1, 1, 1]} : vector<2x9x32xf32> to vector<2x1x32xf32>
      %12 = vector.shape_cast %11 : vector<2x1x32xf32> to vector<2x32xf32>
      %13 = arith.subf %1, %12 : vector<2x32xf32>
      %c0_7 = arith.constant 0 : index
      %c0_8 = arith.constant 0 : index
      %14 = vector.load %arg8[%c0_7, %c0_8] : memref<2x32xf32, #tpu.memory_space<vmem>>, vector<2x32xf32>
      tpu.vector_store %arg8[%c0_7, %c0_8], %13 {strides = array<i32>} : memref<2x32xf32, #tpu.memory_space<vmem>>, vector<2x32xf32>,
    } else {
    }
    %c0_i32_3 = arith.constant 0 : i32
    %5 = arith.cmpi ne, %arg1, %c0_i32_3 : i32
    %6 = arith.extui %5 : i1 to i32
    %c0_i32_4 = arith.constant 0 : i32
    %7 = arith.cmpi ne, %6, %c0_i32_4 : i32
    scf.if %7 {
      %c0_7 = arith.constant 0 : index
      %c0_8 = arith.constant 0 : index
      %11 = vector.load %arg8[%c0_7, %c0_8] : memref<2x32xf32, #tpu.memory_space<vmem>>, vector<2x32xf32>
      %12 = arith.addf %11, %1 : vector<2x32xf32>
      %c0_9 = arith.constant 0 : index
      %c0_10 = arith.constant 0 : index
      %13 = vector.load %arg8[%c0_9, %c0_10] : memref<2x32xf32, #tpu.memory_space<vmem>>, vector<2x32xf32>
      tpu.vector_store %arg8[%c0_9, %c0_10], %12 {strides = array<i32>} : memref<2x32xf32, #tpu.memory_space<vmem>>, vector<2x32xf32>,
    } else {
    }
    %c0_i32_5 = arith.constant 0 : i32
    %8 = arith.cmpi eq, %arg1, %c0_i32_5 : i32
    %9 = arith.extui %8 : i1 to i32
    %c0_i32_6 = arith.constant 0 : i32
    %10 = arith.cmpi ne, %9, %c0_i32_6 : i32
    scf.if %10 {
      %c0_7 = arith.constant 0 : index
      %c0_8 = arith.constant 0 : index
      %11 = vector.load %arg8[%c0_7, %c0_8] : memref<2x32xf32, #tpu.memory_space<vmem>>, vector<2x32xf32>
      %cst_9 = arith.constant 1.250000e-01 : f32
      %12 = vector.broadcast %cst_9 : f32 to vector<2x32xf32>
      %13 = arith.mulf %11, %12 : vector<2x32xf32>
      %cst_10 = arith.constant dense<0.000000e+00> : vector<2xf32>
      %14 = vector.multi_reduction <add>, %13, %cst_10 [1] : vector<2x32xf32> to vector<2xf32>
      %15 = vector.shape_cast %14 : vector<2xf32> to vector<2x1xf32>
      %cst_11 = arith.constant 3.125000e-02 : f32
      %16 = vector.broadcast %cst_11 : f32 to vector<2x1xf32>
      %17 = arith.mulf %15, %16 : vector<2x1xf32>
      %18 = vector.broadcast %17 : vector<2x1xf32> to vector<2x32xf32>
      %19 = arith.subf %13, %18 : vector<2x32xf32>
      %20 = arith.mulf %19, %19 : vector<2x32xf32>
      %cst_12 = arith.constant dense<0.000000e+00> : vector<2xf32>
      %21 = vector.multi_reduction <add>, %20, %cst_12 [1] : vector<2x32xf32> to vector<2xf32>
      %22 = vector.shape_cast %21 : vector<2xf32> to vector<2x1xf32>
      %cst_13 = arith.constant 3.125000e-02 : f32
      %23 = vector.broadcast %cst_13 : f32 to vector<2x1xf32>
      %24 = arith.mulf %22, %23 : vector<2x1xf32>
      %cst_14 = arith.constant 9.99999997E-7 : f32
      %25 = vector.broadcast %cst_14 : f32 to vector<2x1xf32>
      %26 = arith.addf %24, %25 : vector<2x1xf32>
      %27 = math.rsqrt %26 : vector<2x1xf32>
      %28 = vector.broadcast %27 : vector<2x1xf32> to vector<2x32xf32>
      %29 = arith.mulf %19, %28 : vector<2x32xf32>
      %c0_15 = arith.constant 0 : index
      %c0_16 = arith.constant 0 : index
      %30 = vector.load %arg3[%c0_15, %c0_16] : memref<1x32xf32, #tpu.memory_space<vmem>>, vector<1x32xf32>
      %31 = vector.broadcast %30 : vector<1x32xf32> to vector<2x32xf32>
      %32 = arith.mulf %29, %31 : vector<2x32xf32>
      %c0_17 = arith.constant 0 : index
      %c0_18 = arith.constant 0 : index
      %33 = vector.load %arg4[%c0_17, %c0_18] : memref<1x32xf32, #tpu.memory_space<vmem>>, vector<1x32xf32>
      %34 = vector.broadcast %33 : vector<1x32xf32> to vector<2x32xf32>
      %35 = arith.addf %32, %34 : vector<2x32xf32>
      %c0_19 = arith.constant 0 : index
      %c0_20 = arith.constant 0 : index
      %36 = vector.load %arg5[%c0_19, %c0_20] : memref<32x128xf32, #tpu.memory_space<vmem>>, vector<32x128xf32>
      %cst_21 = arith.constant dense<0.000000e+00> : vector<2x128xf32>
      %37 = tpu.matmul %35, %36, %cst_21 {dimension_numbers = #tpu.dot_dimension_numbers<[1], [0], [0], [1], [0, 0, 1, 1], [], []>} : vector<2x32xf32>, vector<32x128xf32>, vector<2x128xf32> -> vector<2x128xf32>
      %c0_22 = arith.constant 0 : index
      %c0_23 = arith.constant 0 : index
      %38 = vector.load %arg6[%c0_22, %c0_23] : memref<1x128xf32, #tpu.memory_space<vmem>>, vector<1x128xf32>
      %39 = vector.broadcast %38 : vector<1x128xf32> to vector<2x128xf32>
      %40 = arith.addf %37, %39 : vector<2x128xf32>
      %c0_24 = arith.constant 0 : index
      %c0_25 = arith.constant 0 : index
      %41 = vector.load %arg7[%c0_24, %c0_25] : memref<2x128xf32, #tpu.memory_space<vmem>>, vector<2x128xf32>
      tpu.vector_store %arg7[%c0_24, %c0_25], %40 {strides = array<i32>} : memref<2x128xf32, #tpu.memory_space<vmem>>, vector<2x128xf32>,
    } else {
    }
    return
  }
  func.func @transform_0(%arg0: i32, %arg1: i32) -> (i32, i32, i32) {
    %c0_i32 = arith.constant 0 : i32
    %c0_i32_0 = arith.constant 0 : i32
    return %arg0, %arg1, %c0_i32 : i32, i32, i32
  }
  func.func @transform_1(%arg0: i32, %arg1: i32) -> (i32, i32) {
    %c0_i32 = arith.constant 0 : i32
    %c0_i32_0 = arith.constant 0 : i32
    %c0_i32_1 = arith.constant 0 : i32
    return %c0_i32, %c0_i32_0 : i32, i32
  }
  func.func @transform_2(%arg0: i32, %arg1: i32) -> (i32, i32) {
    %c0_i32 = arith.constant 0 : i32
    %c0_i32_0 = arith.constant 0 : i32
    %c0_i32_1 = arith.constant 0 : i32
    return %c0_i32, %c0_i32_0 : i32, i32
  }
  func.func @transform_3(%arg0: i32, %arg1: i32) -> (i32, i32) {
    %c0_i32 = arith.constant 0 : i32
    %c0_i32_0 = arith.constant 0 : i32
    %c0_i32_1 = arith.constant 0 : i32
    return %c0_i32, %c0_i32_0 : i32, i32
  }
  func.func @transform_4(%arg0: i32, %arg1: i32) -> (i32, i32) {
    %c0_i32 = arith.constant 0 : i32
    %c0_i32_0 = arith.constant 0 : i32
    %c0_i32_1 = arith.constant 0 : i32
    return %c0_i32, %c0_i32_0 : i32, i32
  }
  func.func @transform_5(%arg0: i32, %arg1: i32) -> (i32, i32) {
    %c0_i32 = arith.constant 0 : i32
    %c0_i32_0 = arith.constant 0 : i32
    return %arg0, %c0_i32 : i32, i32
  }
}

</mosaic_0001>

<bundles_post_ra>
// kernel: tpu_custom_call.1
= control target key start
LH: loop header
LB: loop body
LE: loop exit
PB: predicated region body
PF: predicated region fallthrough
CT: control target
= control target key end

     0   :  { %vm25_vm0 = vcmask 261120   ;;  %vm27_vm1 = vcmask 253952   ;;  %s261_s0 = inlined_call_operand.vmem [shape: f32[2,9,32], index: 0, kind: input, shape index: {}]   ;;  %s262_s1 = inlined_call_operand.vmem [shape: f32[1,32], index: 1, kind: input, shape index: {}]   ;;  %s263_s2 = inlined_call_operand.vmem [shape: f32[1,32], index: 2, kind: input, shape index: {}]   ;;  %s264_s3 = inlined_call_operand.vmem [shape: f32[32,128], index: 3, kind: input, shape index: {}]   ;;  %s265_s4 = inlined_call_operand.vmem [shape: f32[1,128], index: 4, kind: input, shape index: {}]   ;;  %s266_s5 = inlined_call_operand.hbm [shape: f32[2,128], index: 5, kind: output, shape index: {}]  }
   0x1   :  { %v21_v0 = vld [vmem:[%s261_s0] sm:$0xff]  ;;  %v22_v1 = vld [vmem:[%s261_s0 + $0x8] sm:$0x1]  ;;  %v23_v2 = vld [vmem:[%s261_s0 + $0x10] sm:$0xff] }
   0x2   :  { %v24_v3 = vld [vmem:[%s261_s0 + $0x18] sm:$0x1]  ;;  %v26_v4 = vsel %vm25_vm0, %v21_v0, 0.0  ;;  %v28_v5 = vsel %vm27_vm1, %v22_v1, 0.0  ;;  %v36_v6 = vsel %vm25_vm0, %v23_v2, 0.0 }
   0x3   :  { %v29_v7 = vadd.f32 %v28_v5, %v26_v4  ;;  %v37_v8 = vsel %vm27_vm1, %v24_v3, 0.0 }
   0x4   :  { %v38_v9 = vadd.f32 %v37_v8, %v36_v6 }
   0x5   :  { %10 = vsyncpa [#allocation4], 0  ;;  %v30_v10 = vrot.slane %v29_v7, 4  ;;  %vm54_vm2 = vcmask 1041409   ;;  %vm57_vm3 = vcmask 254976   ;;  %v113_v34 = vld [vmem:[%s264_s3 + $0x18] sm:$0xff] }
   0x6   :  { %v39_v11 = vrot.slane %v38_v9, 4  ;;  %133 = vmatpush.msra.mxu0 %v113_v34  ;;  %v112_v35 = vld [vmem:[%s264_s3 + $0x10] sm:$0xff]  ;;  %v111_v36 = vld [vmem:[%s264_s3 + $0x8] sm:$0xff]  ;;  %v110_v37 = vld [vmem:[%s264_s3] sm:$0xff]  ;;  %s191_s13 = smov [#allocation3]  }
   0x7   :  { %v31_v12 = vadd.f32 %v30_v10, %v29_v7  ;;  %v160_v47 = vld [vmem:[%s262_s1] ss:$0 sm:$0xff]  ;;  %s147_s14 = sshll.u32 %s191_s13, 4  ;;  %s149_s1 = sshll.u32 %s266_s5, 4  ;;  %s148_s14 = int_to_ptr.vmem [resolvable:$true] %s147_s14  ;;  %s150_s1 = int_to_ptr.hbm [resolvable:$true] %s149_s1 }
   0x8   :  { %v40_v13 = vadd.f32 %v39_v11, %v38_v9  ;;  %134 = vmatpush.msra.mxu0 %v112_v35  ;;  %v161_v50 = vld [vmem:[%s263_s2] ss:$0 sm:$0xff] }
   0x9   :  { %v32_v14 = vrot.slane %v31_v12, 2  ;;  %v162_v53 = vld [vmem:[%s265_s4] ss:$0 sm:$0xff] }
   0xa   :  { %v41_v15 = vrot.slane %v40_v13, 2  ;;  %135 = vmatpush.msra.mxu0 %v111_v36 }
   0xb   :  { %v33_v16 = vadd.f32 %v32_v14, %v31_v12 }
   0xc   :  { %v42_v17 = vadd.f32 %v41_v15, %v40_v13  ;;  %136 = vmatpush.msra.mxu0 %v110_v37 }
   0xd   :  { %v34_v18 = vrot.slane %v33_v16, 1 }
   0xe   :  { %v43_v19 = vrot.slane %v42_v17, 1 }
   0xf   :  { %v35_v20 = vadd.f32 %v34_v18, %v33_v16 }
  0x10   :  { %v44_v21 = vadd.f32 %v43_v19, %v42_v17 }
  0x11   :  { %v49_v22 = vsub.f32 %v35_v20, %v21_v0 }
  0x12   :  { %v50_v23 = vsub.f32 %v44_v21, %v23_v2 }
  0x14   :  { %v53_v24 = vrot.slane %v50_v23, 7 }
  0x16   :  { %v55_v25 = vsel %vm54_vm2, %v53_v24, %v49_v22 }
  0x17   :  { %58 = vst.msk [vmem:[#allocation2] sm:$0x3] %vm57_vm3, %v55_v25 }
  0x1e   :  { %v75_v26 = vld [vmem:[#allocation2] sm:$0x3] }
  0x1f   :  { %v76_v27 = vmul.f32 0.125, %v75_v26 }
  0x21   :  { %v78_v28 = vsel %vm57_vm3, %v76_v27, 0.0 }
  0x22   :  { %79 = vadd.xlane.f32.xlu0 %v78_v28 }
  0x95   :  { %v80_v29 = vpop.xlane.xlu0 %79 }
  0x96   :  { %v81_v30 = vmul.f32 0.03125, %v80_v29 }
  0x98   :  { %v82_v31 = vsub.f32 %v76_v27, %v81_v30 }
  0x9a   :  { %v83_v32 = vmul.f32 %v82_v31, %v82_v31 }
  0x9c   :  { %v84_v33 = vsel %vm57_vm3, %v83_v32, 0.0 }
  0x9d   :  { %85 = vadd.xlane.f32.xlu0 %v84_v33 }
 0x110   :  { %v86_v38 = vpop.xlane.xlu0 %85 }
 0x111   :  { %v87_v39 = vmul.f32 0.03125, %v86_v38 }
 0x113   :  { %v88_v40 = vadd.f32 1e-06, %v87_v39 }
 0x115   :  { %163 = vrsqrt.f32 %v88_v40  ;;  %vm95_vm5 = vweird.f32 %v88_v40 }
 0x11b   :  { %v164_v41 = vpop.eup %163 }
 0x11c   :  { %v90_v42 = vmul.f32 %v164_v41, %v88_v40  ;;  %vm96_vm4 = vweird.f32 %v164_v41 }
 0x11d   :  { %vm97_vm6 = vmor %vm95_vm5, %vm96_vm4 }
 0x11e   :  { %v91_v43 = vmul.f32 %v164_v41, %v90_v42 }
 0x120   :  { %v92_v44 = vmul.f32 0.5, %v91_v43 }
 0x122   :  { %v93_v45 = vsub.f32 1.5, %v92_v44 }
 0x124   :  { %v94_v46 = vmul.f32 %v164_v41, %v93_v45 }
 0x126   :  { %v98_v48 = vsel %vm97_vm6, %v164_v41, %v94_v46 }
 0x127   :  { %v99_v49 = vmul.f32 %v98_v48, %v82_v31 }
 0x129   :  { %v104_v51 = vmul.f32 %v160_v47, %v99_v49 }
 0x12b   :  { %v109_v52 = vadd.f32 %v161_v50, %v104_v51 }
 0x12d   :  { %158 = vmatmul.msk.f32.vlgmr.msra.gmra.mxu0 %vm25_vm0, %v109_v52 }
 0x1aa   :  { %v138_v54 = vpop.f32.mrf.mxu0 }
 0x1ab   :  { %v139_v55 = vadd.f32 %v162_v53, %v138_v54 }
 0x1ad   :  { %141 = vst [vmem:[#allocation3] sm:$0x3] %v139_v55 }
 0x1ae   :  { %152 = dma.vmem_to_hbm [thread:$0]  %s148_s14, 32, %s150_s1, [#allocation4]  }
 0x1af   :  { %189 = dma.done.wait [#allocation4], 32  }
 0x1b0   :  { %190 = vsyncadd [#allocation4], 4294967264 }
 0x1b1   :  { %157 = vsyncpa [#allocation4], 1 }

</bundles_post_ra>
